<compile_context>
chip_gen: v7x
topology: tpu7x:2x2x1
jax: 0.10.0
libtpu: 0.0.40
codegen_flags: <defaults>
</compile_context>

<pallas_src>
import math
from functools import partial

import jax
import jax.numpy as jnp
from jax.experimental import pallas as pl
from jax.experimental.pallas import tpu as pltpu

EPS = 1e-6
NUM_SPLITS = 2           # megacore / v7x dual-TensorCore partial sums
_PALLAS_MIN_BOXES = 512  # below this, plain XLA fusion is strictly faster


def _cdiv(a, b):
    return -(-a // b)


def _round_up(a, b):
    return _cdiv(a, b) * b


def _giou_loss_kernel(b1_ref, b2_ref, out_ref, *, n_valid, tm, tiles_per_split, eps):
    # b1_ref / b2_ref: (4, TM, 128) coordinate planes (x1, y1, x2, y2).
    # out_ref: (1, 8, 128) f32 partial-sum block, resident across the reduction axis.
    c = pl.program_id(0)  # parallel split (megacore / v7x TC axis)
    i = pl.program_id(1)  # reduction over tiles within this split

    @pl.when(i == 0)
    def _init():
        out_ref[...] = jnp.zeros_like(out_ref)

    f32 = jnp.float32
    x11 = b1_ref[0].astype(f32)
    y11 = b1_ref[1].astype(f32)
    x12 = b1_ref[2].astype(f32)
    y12 = b1_ref[3].astype(f32)
    x21 = b2_ref[0].astype(f32)
    y21 = b2_ref[1].astype(f32)
    x22 = b2_ref[2].astype(f32)
    y22 = b2_ref[3].astype(f32)

    area1 = (x12 - x11) * (y12 - y11)
    area2 = (x22 - x21) * (y22 - y21)

    # Intersection.
    wh_x = jnp.maximum(jnp.minimum(x12, x22) - jnp.maximum(x11, x21), 0.0)
    wh_y = jnp.maximum(jnp.minimum(y12, y22) - jnp.maximum(y11, y21), 0.0)
    overlap = wh_x * wh_y

    union = jnp.maximum(area1 + area2 - overlap, eps)
    ious = overlap * pl.reciprocal(union, approx=True)  # EUP slot, frees VPU

    # Smallest enclosing box.
    enc_x = jnp.maximum(jnp.maximum(x12, x22) - jnp.minimum(x11, x21), 0.0)
    enc_y = jnp.maximum(jnp.maximum(y12, y22) - jnp.minimum(y11, y21), 0.0)
    enclose = jnp.maximum(enc_x * enc_y, eps)

    gious = ious - (enclose - union) * pl.reciprocal(enclose, approx=True)
    loss = 1.0 - gious  # (TM, 128)

    # Mask out padded boxes of the (possibly partial) last tile.
    t_global = c * tiles_per_split + i
    row = jax.lax.broadcasted_iota(jnp.int32, (tm, 128), 0)
    lane = jax.lax.broadcasted_iota(jnp.int32, (tm, 128), 1)
    box_idx = t_global * (tm * 128) + row * 128 + lane
    loss = jnp.where(box_idx < n_valid, loss, 0.0)

    # Steady-state reduction on the VPU only: fold sublane groups into (8, 128).
    out_ref[0] += loss.reshape(tm // 8, 8, 128).sum(axis=0)


def giou_loss(bboxes1: jax.Array, bboxes2: jax.Array, *, eps: float = EPS,
              block_rows: int = 512) -> jax.Array:
    """GIoU loss between paired boxes. bboxes*: [..., 4]. Returns f32 scalar."""
    assert bboxes1.shape == bboxes2.shape and bboxes1.shape[-1] == 4
    n = math.prod(bboxes1.shape[:-1]) if bboxes1.shape[:-1] else 1
    assert n > 0

    # Tiny problems: the fixed pallas_call + relayout overhead dwarfs the work.
    if n < _PALLAS_MIN_BOXES:
        return _giou_loss_ref(bboxes1.astype(jnp.float32),
                              bboxes2.astype(jnp.float32), eps=eps)

    # DMA bf16/f16 in their storage dtype (half the HBM bytes); everything else f32.
    if bboxes1.dtype in (jnp.bfloat16, jnp.float16, jnp.float32):
        storage_dtype = bboxes1.dtype
    else:
        storage_dtype = jnp.float32

    # Tile geometry (TM = sublane rows per tile; multiple of 16 covers f32 & bf16 packing).
    rows = _cdiv(n, 128)
    block_rows = max(16, _round_up(block_rows, 16))
    rows_per_split = _cdiv(rows, NUM_SPLITS)
    tm = min(block_rows, _round_up(rows_per_split, 16))
    tiles_per_split = _cdiv(rows_per_split, tm)
    rows_pad = NUM_SPLITS * tiles_per_split * tm
    n_pad = rows_pad * 128

    def to_planes(b):
        # (..., 4) -> (4, rows_pad, 128); pad+transpose fuse into one XLA pass.
        b = b.reshape(n, 4).astype(storage_dtype)
        b = jnp.transpose(b, (1, 0))                 # (4, n)
        b = jnp.pad(b, ((0, 0), (0, n_pad - n)))     # zero padding, masked in-kernel
        return b.reshape(4, rows_pad, 128)

    b1 = to_planes(bboxes1)
    b2 = to_planes(bboxes2)

    kernel = partial(_giou_loss_kernel, n_valid=n, tm=tm,
                     tiles_per_split=tiles_per_split, eps=eps)

    itemsize = jnp.finfo(storage_dtype).bits // 8
    cost = pl.CostEstimate(
        flops=30 * n_pad,
        transcendentals=2 * n_pad,
        bytes_accessed=2 * 4 * n_pad * itemsize + NUM_SPLITS * 8 * 128 * 4,
    )

    partials = pl.pallas_call(
        kernel,
        out_shape=jax.ShapeDtypeStruct((NUM_SPLITS, 8, 128), jnp.float32),
        grid=(NUM_SPLITS, tiles_per_split),
        in_specs=[
            pl.BlockSpec((4, tm, 128), lambda c, i: (0, c * tiles_per_split + i, 0)),
            pl.BlockSpec((4, tm, 128), lambda c, i: (0, c * tiles_per_split + i, 0)),
        ],
        out_specs=pl.BlockSpec((1, 8, 128), lambda c, i: (c, 0, 0)),
        compiler_params=pltpu.CompilerParams(
            dimension_semantics=("parallel", "arbitrary")),
        cost_estimate=cost,
    )(b1, b2)

    # Single cross-lane reduce + divide by the TRUE box count (unbiased mean).
    return jnp.sum(partials) / jnp.float32(n)


def _giou_loss_ref(b1, b2, eps=EPS):
    # Pure-JAX reference mirroring the PyTorch forward.
    area1 = (b1[..., 2] - b1[..., 0]) * (b1[..., 3] - b1[..., 1])
    area2 = (b2[..., 2] - b2[..., 0]) * (b2[..., 3] - b2[..., 1])
    lt = jnp.maximum(b1[..., :2], b2[..., :2])
    rb = jnp.minimum(b1[..., 2:], b2[..., 2:])
    wh = jnp.clip(rb - lt, 0.0)
    overlap = wh[..., 0] * wh[..., 1]
    union = jnp.maximum(area1 + area2 - overlap, eps)
    ious = overlap / union
    enc_lt = jnp.minimum(b1[..., :2], b2[..., :2])
    enc_rb = jnp.maximum(b1[..., 2:], b2[..., 2:])
    enc_wh = jnp.clip(enc_rb - enc_lt, 0.0)
    enc_area = jnp.maximum(enc_wh[..., 0] * enc_wh[..., 1], eps)
    gious = ious - (enc_area - union) / enc_area
    return jnp.mean(1.0 - gious)


if __name__ == "__main__":
    key = jax.random.PRNGKey(0)
    k1, k2, k3, k4 = jax.random.split(key, 4)

    def make_boxes(kc, ks, shape):
        center = jax.random.uniform(kc, shape + (2,), minval=0.0, maxval=10.0)
        size = jax.random.uniform(ks, shape + (2,), minval=0.5, maxval=3.0)
        return jnp.concatenate([center - size, center + size], axis=-1).astype(jnp.float32)

    # 2 x 3000 = 6000 boxes: exercises tiling, the partial-tile mask and both splits.
    shape = (2, 3000)
    bboxes1 = make_boxes(k1, k2, shape)
    bboxes2 = make_boxes(k3, k4, shape)

    ref = _giou_loss_ref(bboxes1, bboxes2)

    # Default (production) tile size.
    loss = giou_loss(bboxes1, bboxes2)
    jax.block_until_ready(loss)
    # approx reciprocal changes low-order bits vs. exact division -> loose tol.
    assert jnp.allclose(loss, ref, atol=2e-3, rtol=2e-3), (loss, ref)

    # Small tiles: multi-tile accumulation along the reduction axis + masking.
    loss_small = giou_loss(bboxes1, bboxes2, block_rows=16)
    jax.block_until_ready(loss_small)
    assert jnp.allclose(loss_small, ref, atol=2e-3, rtol=2e-3), (loss_small, ref)
    assert jnp.allclose(loss_small, loss, atol=1e-4, rtol=1e-4), (loss_small, loss)

    # bf16 storage path (half the HBM traffic); compare against bf16-rounded reference.
    b1_bf16 = bboxes1.astype(jnp.bfloat16)
    b2_bf16 = bboxes2.astype(jnp.bfloat16)
    loss_bf16 = giou_loss(b1_bf16, b2_bf16)
    jax.block_until_ready(loss_bf16)
    ref_bf16 = _giou_loss_ref(b1_bf16.astype(jnp.float32), b2_bf16.astype(jnp.float32))
    assert jnp.allclose(loss_bf16, ref_bf16, atol=2e-3, rtol=2e-3), (loss_bf16, ref_bf16)

    print("KERNEL_OK")
</pallas_src>

<mosaic_0001>
module attributes {stable_mosaic.version = 11 : i64} {
  func.func @_giou_loss_kernel(%arg0: i32, %arg1: i32, %arg2: memref<4x32x128xf32, #tpu.memory_space<vmem>>, %arg3: memref<4x32x128xf32, #tpu.memory_space<vmem>>, %arg4: memref<1x8x128xf32, #tpu.memory_space<vmem>>) attributes {dimension_semantics = [#tpu.dimension_semantics<parallel>, #tpu.dimension_semantics<arbitrary>], iteration_bounds = array<i64: 2, 1>, scalar_prefetch = 0 : i64, scratch_operands = 0 : i64, tpu.core_type = #tpu.core_type<tc>, window_params = [{transform_indices = @transform_0, window_bounds = array<i64: 4, 32, 128>}, {transform_indices = @transform_1, window_bounds = array<i64: 4, 32, 128>}, {transform_indices = @transform_2, window_bounds = array<i64: 1, 8, 128>}]} {
    %c0_i32 = arith.constant 0 : i32
    %0 = arith.cmpi eq, %arg1, %c0_i32 : i32
    %1 = arith.extui %0 : i1 to i32
    %c0_i32_0 = arith.constant 0 : i32
    %2 = arith.cmpi ne, %1, %c0_i32_0 : i32
    scf.if %2 {
      %cst_35 = arith.constant 0.000000e+00 : f32
      %83 = vector.broadcast %cst_35 : f32 to vector<1x8x128xf32>
      %c0_36 = arith.constant 0 : index
      %c0_37 = arith.constant 0 : index
      %c0_38 = arith.constant 0 : index
      %84 = vector.load %arg4[%c0_36, %c0_37, %c0_38] : memref<1x8x128xf32, #tpu.memory_space<vmem>>, vector<1x8x128xf32>
      tpu.vector_store %arg4[%c0_36, %c0_37, %c0_38], %83 {strides = array<i32>} : memref<1x8x128xf32, #tpu.memory_space<vmem>>, vector<1x8x128xf32>,
    } else {
    }
    %c0 = arith.constant 0 : index
    %c0_1 = arith.constant 0 : index
    %c0_2 = arith.constant 0 : index
    %3 = vector.load %arg2[%c0, %c0_1, %c0_2] : memref<4x32x128xf32, #tpu.memory_space<vmem>>, vector<1x32x128xf32>
    %4 = vector.shape_cast %3 : vector<1x32x128xf32> to vector<32x128xf32>
    %c1 = arith.constant 1 : index
    %c0_3 = arith.constant 0 : index
    %c0_4 = arith.constant 0 : index
    %5 = vector.load %arg2[%c1, %c0_3, %c0_4] : memref<4x32x128xf32, #tpu.memory_space<vmem>>, vector<1x32x128xf32>
    %6 = vector.shape_cast %5 : vector<1x32x128xf32> to vector<32x128xf32>
    %c2 = arith.constant 2 : index
    %c0_5 = arith.constant 0 : index
    %c0_6 = arith.constant 0 : index
    %7 = vector.load %arg2[%c2, %c0_5, %c0_6] : memref<4x32x128xf32, #tpu.memory_space<vmem>>, vector<1x32x128xf32>
    %8 = vector.shape_cast %7 : vector<1x32x128xf32> to vector<32x128xf32>
    %c3 = arith.constant 3 : index
    %c0_7 = arith.constant 0 : index
    %c0_8 = arith.constant 0 : index
    %9 = vector.load %arg2[%c3, %c0_7, %c0_8] : memref<4x32x128xf32, #tpu.memory_space<vmem>>, vector<1x32x128xf32>
    %10 = vector.shape_cast %9 : vector<1x32x128xf32> to vector<32x128xf32>
    %c0_9 = arith.constant 0 : index
    %c0_10 = arith.constant 0 : index
    %c0_11 = arith.constant 0 : index
    %11 = vector.load %arg3[%c0_9, %c0_10, %c0_11] : memref<4x32x128xf32, #tpu.memory_space<vmem>>, vector<1x32x128xf32>
    %12 = vector.shape_cast %11 : vector<1x32x128xf32> to vector<32x128xf32>
    %c1_12 = arith.constant 1 : index
    %c0_13 = arith.constant 0 : index
    %c0_14 = arith.constant 0 : index
    %13 = vector.load %arg3[%c1_12, %c0_13, %c0_14] : memref<4x32x128xf32, #tpu.memory_space<vmem>>, vector<1x32x128xf32>
    %14 = vector.shape_cast %13 : vector<1x32x128xf32> to vector<32x128xf32>
    %c2_15 = arith.constant 2 : index
    %c0_16 = arith.constant 0 : index
    %c0_17 = arith.constant 0 : index
    %15 = vector.load %arg3[%c2_15, %c0_16, %c0_17] : memref<4x32x128xf32, #tpu.memory_space<vmem>>, vector<1x32x128xf32>
    %16 = vector.shape_cast %15 : vector<1x32x128xf32> to vector<32x128xf32>
    %c3_18 = arith.constant 3 : index
    %c0_19 = arith.constant 0 : index
    %c0_20 = arith.constant 0 : index
    %17 = vector.load %arg3[%c3_18, %c0_19, %c0_20] : memref<4x32x128xf32, #tpu.memory_space<vmem>>, vector<1x32x128xf32>
    %18 = vector.shape_cast %17 : vector<1x32x128xf32> to vector<32x128xf32>
    %19 = arith.subf %8, %4 : vector<32x128xf32>
    %20 = arith.subf %10, %6 : vector<32x128xf32>
    %21 = arith.mulf %19, %20 : vector<32x128xf32>
    %22 = arith.subf %16, %12 : vector<32x128xf32>
    %23 = arith.subf %18, %14 : vector<32x128xf32>
    %24 = arith.mulf %22, %23 : vector<32x128xf32>
    %25 = arith.minimumf %8, %16 : vector<32x128xf32>
    %26 = arith.maximumf %4, %12 : vector<32x128xf32>
    %27 = arith.subf %25, %26 : vector<32x128xf32>
    %cst = arith.constant 0.000000e+00 : f32
    %28 = vector.broadcast %cst : f32 to vector<32x128xf32>
    %29 = arith.maximumf %27, %28 : vector<32x128xf32>
    %30 = arith.minimumf %10, %18 : vector<32x128xf32>
    %31 = arith.maximumf %6, %14 : vector<32x128xf32>
    %32 = arith.subf %30, %31 : vector<32x128xf32>
    %cst_21 = arith.constant 0.000000e+00 : f32
    %33 = vector.broadcast %cst_21 : f32 to vector<32x128xf32>
    %34 = arith.maximumf %32, %33 : vector<32x128xf32>
    %35 = arith.mulf %29, %34 : vector<32x128xf32>
    %36 = arith.addf %21, %24 : vector<32x128xf32>
    %37 = arith.subf %36, %35 : vector<32x128xf32>
    %cst_22 = arith.constant 9.99999997E-7 : f32
    %38 = vector.broadcast %cst_22 : f32 to vector<32x128xf32>
    %39 = arith.maximumf %37, %38 : vector<32x128xf32>
    %40 = tpu.reciprocal %39 {approx = true} : vector<32x128xf32> -> vector<32x128xf32>
    %41 = arith.mulf %35, %40 : vector<32x128xf32>
    %42 = arith.maximumf %8, %16 : vector<32x128xf32>
    %43 = arith.minimumf %4, %12 : vector<32x128xf32>
    %44 = arith.subf %42, %43 : vector<32x128xf32>
    %cst_23 = arith.constant 0.000000e+00 : f32
    %45 = vector.broadcast %cst_23 : f32 to vector<32x128xf32>
    %46 = arith.maximumf %44, %45 : vector<32x128xf32>
    %47 = arith.maximumf %10, %18 : vector<32x128xf32>
    %48 = arith.minimumf %6, %14 : vector<32x128xf32>
    %49 = arith.subf %47, %48 : vector<32x128xf32>
    %cst_24 = arith.constant 0.000000e+00 : f32
    %50 = vector.broadcast %cst_24 : f32 to vector<32x128xf32>
    %51 = arith.maximumf %49, %50 : vector<32x128xf32>
    %52 = arith.mulf %46, %51 : vector<32x128xf32>
    %cst_25 = arith.constant 9.99999997E-7 : f32
    %53 = vector.broadcast %cst_25 : f32 to vector<32x128xf32>
    %54 = arith.maximumf %52, %53 : vector<32x128xf32>
    %55 = arith.subf %54, %39 : vector<32x128xf32>
    %56 = tpu.reciprocal %54 {approx = true} : vector<32x128xf32> -> vector<32x128xf32>
    %57 = arith.mulf %55, %56 : vector<32x128xf32>
    %58 = arith.subf %41, %57 : vector<32x128xf32>
    %cst_26 = arith.constant 1.000000e+00 : f32
    %59 = vector.broadcast %cst_26 : f32 to vector<32x128xf32>
    %60 = arith.subf %59, %58 : vector<32x128xf32>
    %c1_i32 = arith.constant 1 : i32
    %61 = arith.muli %arg0, %c1_i32 : i32
    %62 = arith.addi %61, %arg1 : i32
    %63 = tpu.iota {dimensions = array<i32: 0>} : vector<32x128xi32>
    %64 = tpu.iota {dimensions = array<i32: 1>} : vector<32x128xi32>
    %c4096_i32 = arith.constant 4096 : i32
    %65 = arith.muli %62, %c4096_i32 : i32
    %c128_i32 = arith.constant 128 : i32
    %66 = vector.broadcast %c128_i32 : i32 to vector<32x128xi32>
    %67 = arith.muli %63, %66 : vector<32x128xi32>
    %68 = vector.broadcast %65 : i32 to vector<32x128xi32>
    %69 = arith.addi %68, %67 : vector<32x128xi32>
    %70 = arith.addi %69, %64 : vector<32x128xi32>
    %c6000_i32 = arith.constant 6000 : i32
    %71 = vector.broadcast %c6000_i32 : i32 to vector<32x128xi32>
    %72 = arith.cmpi slt, %70, %71 : vector<32x128xi32>
    %cst_27 = arith.constant 0.000000e+00 : f32
    %73 = vector.broadcast %cst_27 : f32 to vector<32x128xf32>
    %74 = arith.select %72, %60, %73 : vector<32x128xi1>, vector<32x128xf32>
    %c0_28 = arith.constant 0 : index
    %c0_29 = arith.constant 0 : index
    %c0_30 = arith.constant 0 : index
    %75 = vector.load %arg4[%c0_28, %c0_29, %c0_30] : memref<1x8x128xf32, #tpu.memory_space<vmem>>, vector<1x8x128xf32>
    %76 = vector.shape_cast %75 : vector<1x8x128xf32> to vector<8x128xf32>
    %77 = vector.shape_cast %74 : vector<32x128xf32> to vector<4x8x128xf32>
    %cst_31 = arith.constant dense<0.000000e+00> : vector<8x128xf32>
    %78 = vector.multi_reduction <add>, %77, %cst_31 [0] : vector<4x8x128xf32> to vector<8x128xf32>
    %79 = arith.addf %76, %78 : vector<8x128xf32>
    %c0_32 = arith.constant 0 : index
    %c0_33 = arith.constant 0 : index
    %c0_34 = arith.constant 0 : index
    %80 = vector.load %arg4[%c0_32, %c0_33, %c0_34] : memref<1x8x128xf32, #tpu.memory_space<vmem>>, vector<1x8x128xf32>
    %81 = vector.shape_cast %80 : vector<1x8x128xf32> to vector<8x128xf32>
    %82 = vector.shape_cast %79 : vector<8x128xf32> to vector<1x8x128xf32>
    tpu.vector_store %arg4[%c0_32, %c0_33, %c0_34], %82 {strides = array<i32>} : memref<1x8x128xf32, #tpu.memory_space<vmem>>, vector<1x8x128xf32>,
    return
  }
  func.func @transform_0(%arg0: i32, %arg1: i32) -> (i32, i32, i32) {
    %c1_i32 = arith.constant 1 : i32
    %0 = arith.muli %arg0, %c1_i32 : i32
    %1 = arith.addi %0, %arg1 : i32
    %c0_i32 = arith.constant 0 : i32
    %c0_i32_0 = arith.constant 0 : i32
    %c0_i32_1 = arith.constant 0 : i32
    return %c0_i32, %1, %c0_i32_0 : i32, i32, i32
  }
  func.func @transform_1(%arg0: i32, %arg1: i32) -> (i32, i32, i32) {
    %c1_i32 = arith.constant 1 : i32
    %0 = arith.muli %arg0, %c1_i32 : i32
    %1 = arith.addi %0, %arg1 : i32
    %c0_i32 = arith.constant 0 : i32
    %c0_i32_0 = arith.constant 0 : i32
    %c0_i32_1 = arith.constant 0 : i32
    return %c0_i32, %1, %c0_i32_0 : i32, i32, i32
  }
  func.func @transform_2(%arg0: i32, %arg1: i32) -> (i32, i32, i32) {
    %c0_i32 = arith.constant 0 : i32
    %c0_i32_0 = arith.constant 0 : i32
    %c0_i32_1 = arith.constant 0 : i32
    return %arg0, %c0_i32, %c0_i32_0 : i32, i32, i32
  }
}

</mosaic_0001>

<bundles_post_ra>
// kernel: tpu_custom_call.1
= control target key start
LH: loop header
LB: loop body
LE: loop exit
PB: predicated region body
PF: predicated region fallthrough
CT: control target
= control target key end

     0   :  { %7 = vsyncpa [#allocation3], 0  ;;  %s1255_s0 = inlined_call_operand.hbm [shape: f32[4,64,128], index: 0, kind: input, shape index: {}]   ;;  %s1256_s1 = inlined_call_operand.hbm [shape: f32[4,64,128], index: 1, kind: input, shape index: {}]   ;;  %s1257_s2 = inlined_call_operand.hbm [shape: f32[2,8,128], index: 2, kind: output, shape index: {}]  }
   0x1   :  { %9 = vsyncpa [#allocation3 + $0x1], 0 }
   0x2   :  { %10 = vsyncpa [#allocation6], 0 }
   0x3   :  { %12 = vsyncpa [#allocation6 + $0x1], 0 }
   0x4   :  { %13 = vsyncpa [#allocation4], 0 }
   0x5   :  { %15 = vsyncpa [#allocation4 + $0x1], 0  ;;  %s877_s9 = smov 0   ;;  %s879_s10 = smov 0  }
   0x6   :  { %s881_s11 = smov 0   ;;  %s883_s12 = smov 0  }
   0x7   :  { %s885_s13 = smov 0   ;;  %s887_s14 = smov 0  }
   0x8 LB: > { %s610_s15 = sadd.s32 4294967295, %s847_s14   ;;  %s611_s16 = sadd.s32 4294967294, %s847_s14   ;;  %s847_s14 = sphi %s887_s14, %s21_s14   ;;  %s843_s13 = sphi %s885_s13, %s1285_s13   ;;  %s839_s12 = sphi %s883_s12, %s1284_s12   ;;  %s835_s11 = sphi %s881_s11, %s1283_s11   ;;  %s831_s10 = sphi %s879_s10, %s1282_s10   ;;  %s827_s9 = sphi %s877_s9, %s1281_s9  }
   0x9   : > { %s33_s17 = sadd.s32 1, %s843_s13  ;;  %s42_s18 = sadd.s32 1, %s835_s11 }
   0xa   : > { %p35_p0 = scmp.ge.s32.totalorder %s33_s17, 2  ;;  %p49_p1 = scmp.ne.s32.totalorder %s835_s11, %s831_s10 }
   0xb   : > { %p50_p2 = scmp.eq.s32.totalorder %s847_s14, 0  ;;  %p55_p3 = scmp.ne.s32.totalorder %s831_s10, %s827_s9 }
   0xc   : > { %s1287_s17 = smov (%p35_p0, %s33_s17), 0  ;;  %p56_p5 = scmp.eq.s32.totalorder %s610_s15, 0 }
   0xd   : > { %p918_p4 = por %p50_p2, %p49_p1  ;;  %s39_s20 = ssub.s32 %s843_s13, %s1287_s17 }
   0xe   : > { %p107_p6 = scmp.eq.s32.totalorder %s610_s15, 1  ;;  %p40_p7 = scmp.eq.s32.totalorder %s39_s20, 0 }
   0xf   : > { %p924_p8 = por %p56_p5, %p55_p3  ;;  %p113_p10 = scmp.eq.s32.totalorder %s611_s16, 1 }
  0x10   : > { %p928_p9 = por %p107_p6, %p49_p1  ;;  %p613_p12 = scmp.ge.s32.totalorder %s847_s14, 2 }
  0x11   : > { %s933_s23 = scalar_select %p40_p7, %s835_s11, %s42_s18  }
  0x12   : > { %p935_p11 = por %p113_p10, %p55_p3  ;;  %129 = sbr.rel (%p613_p12) target bundleno = 50 (0x32), region = 16 }
  0x19   : > { %s943_s25 = sand.u32 1, %s835_s11   ;;  %s657_s26 = sshll.u32 %s843_s13, 9 }
  0x1a   : > { %s614_s27 = sshll.u32 %s943_s25, 7  ;;  %s144_s30 = scalar_lea.hbm %s1255_s0, %s657_s26 }
  0x1b   : > { %s659_s3 = scalar_select %p918_p4, [#allocation0], [#allocation12] }
  0x1c   : > { %s137_s4 = scalar_lea.vmem [#allocation2], %s614_s27  ;;  %s849_s7 = smov 1024  }
  0x1d   : > { %s157_s5 = sshll.u32 %s137_s4, 4  ;;  %s149_s6 = sld [smem:[%s659_s3]]   ;;  %s158_s5 = int_to_ptr.vmem [resolvable:$true] %s157_s5 }
  0x1e   : > { %660 = sst [smem:[#allocation9]] (%p918_p4), %s849_s7  ;;  %s850_s8 = smov 512  }
  0x1f   : > { %661 = sst [smem:[#allocation9 + $0x1]] (%p918_p4), %s850_s8  ;;  %s851_s15 = smov 4  }
  0x20   : > { %662 = sst [smem:[#allocation9 + $0x2]] (%p918_p4), %s851_s15  ;;  %s852_s16 = smov 128  }
  0x21   : > { %663 = sst [smem:[#allocation9 + $0x3]] (%p918_p4), %s852_s16  ;;  %s853_s20 = smov 8  }
  0x22   : > { %664 = sst [smem:[#allocation9 + $0x4]] (%p918_p4), %s852_s16  ;;  %s134_s29 = scalar_lea.sflag [#allocation3], %s943_s25 }
  0x23   : > { %s617_s18 = sshll.u32 %s149_s6, 26  ;;  %665 = sst [smem:[#allocation9 + $0x5]] (%p918_p4), %s853_s20 }
  0x24   : > { %s618_s28 = sadd.s32 134217728, %s617_s18  ;;  %s854_s3 = smov [#allocation8]  }
  0x25   : > { %666 = dma.general (%p918_p4), %s144_s30, 2048, %s158_s5, %s134_s29, %s854_s3, [#allocation9], %s618_s28, 0  }
  0x26   : > { %s191_s8 = scalar_lea.hbm %s1256_s1, %s657_s26  ;;  %s184_s15 = scalar_lea.vmem [#allocation5], %s614_s27 }
  0x27   : > { %s667_s6 = scalar_select %p918_p4, [#allocation0], [#allocation13] }
  0x28   : > { %s204_s16 = sshll.u32 %s184_s15, 4  ;;  %s855_s20 = smov 1024   ;;  %s205_s16 = int_to_ptr.vmem [resolvable:$true] %s204_s16 }
  0x29   : > { %s196_s18 = sld [smem:[%s667_s6]]   ;;  %s856_s30 = smov 512  }
  0x2a   : > { %668 = sst [smem:[#allocation11]] (%p918_p4), %s855_s20  ;;  %s857_s5 = smov 4  }
  0x2b   : > { %669 = sst [smem:[#allocation11 + $0x1]] (%p918_p4), %s856_s30  ;;  %s858_s28 = smov 128  }
  0x2c   : > { %670 = sst [smem:[#allocation11 + $0x2]] (%p918_p4), %s857_s5  ;;  %s859_s27 = smov 8  }
  0x2d   : > { %671 = sst [smem:[#allocation11 + $0x3]] (%p918_p4), %s858_s28  ;;  %s181_s3 = scalar_lea.sflag [#allocation6], %s943_s25 }
  0x2e   : > { %672 = sst [smem:[#allocation11 + $0x4]] (%p918_p4), %s858_s28  ;;  %s860_s4 = smov [#allocation10]  }
  0x2f   : > { %s622_s26 = sshll.u32 %s196_s18, 26  ;;  %673 = sst [smem:[#allocation11 + $0x5]] (%p918_p4), %s859_s27 }
  0x30   : > { %s623_s29 = sadd.s32 134217728, %s622_s26 }
  0x31   : > { %674 = dma.general (%p918_p4), %s191_s8, 2048, %s205_s16, %s181_s3, %s860_s4, [#allocation11], %s623_s29, 0  }
  0x32 PF: > { %p624_p13 = scmp.ge.s32.totalorder %s847_s14, 1  ;;  %p225_p0 = scmp.lt.s32.totalorder %s847_s14, 3 }
  0x34   : > { %p226_p1 = pnand %p624_p13, %p225_p0 }
  0x36   : > { %229 = sbr.rel (%p226_p1) target bundleno = 142 (0x8e), region = 28 }
  0x3d   : > { %s990_s7 = sand.u32 1, %s831_s10  }
  0x3e   : > { %s625_s6 = sshll.u32 %s990_s7, 7  ;;  %s232_s15 = scalar_lea.sflag [#allocation3], %s990_s7 }
  0x3f   : > { %s235_s18 = scalar_lea.vmem [#allocation2], %s625_s6 }
  0x40   : > { %814 = dma.done.wait (%p924_p8), %s232_s15, 2048  }
  0x41   : > { %816 = vsyncadd (%p924_p8), %s232_s15, 4294965248  ;;  %s241_s19 = scalar_lea.sflag [#allocation6], %s990_s7  ;;  %s999_s25 = scalar_lea.vmem [#allocation5], %s625_s6 }
  0x42   : > { %818 = dma.done.wait (%p924_p8), %s241_s19, 2048  }
  0x43   : > { %820 = vsyncadd (%p924_p8), %s241_s19, 4294965248  ;;  %v1005_v0 = vld [vmem:[%s235_s18] sm:$0xff]  ;;  %v1007_v1 = vld [vmem:[%s235_s18 + $0x8] sm:$0xff]  ;;  %s652_s21 = sshll.u32 %s839_s12, 12  ;;  %s627_s8 = sshll.u32 %s990_s7, 3 }
  0x44   : > { %v1009_v2 = vld [vmem:[%s235_s18 + $0x10] sm:$0xff]  ;;  %v1011_v3 = vld [vmem:[%s235_s18 + $0x18] sm:$0xff]  ;;  %v1013_v4 = vld [vmem:[%s235_s18 + $0x20] sm:$0xff]  ;;  %s654_s16 = sshll.u32 %s839_s12, 7  ;;  %s269_s20 = scalar_lea.vmem [#allocation7], %s627_s8 }
  0x45   : > { %1268 = vst [vmem:[#allocation17_spill] sm:$0xff] %v1013_v4  ;;  %v1015_v5 = vld [vmem:[%s235_s18 + $0x28] sm:$0xff]  ;;  %v1017_v6 = vld [vmem:[%s235_s18 + $0x30] sm:$0xff]  ;;  %v1019_v7 = vld [vmem:[%s235_s18 + $0x40] sm:$0xff]  ;;  %s507_s30 = sshll.u32 %s269_s20, 4  ;;  %s1206_s26 = scalar_lea.hbm %s1257_s2, %s654_s16  ;;  %s1208_s30 = int_to_ptr.vmem [resolvable:$true] %s507_s30 }
  0x46   : > { %1269 = vst [vmem:[#allocation18_spill] sm:$0xff] %v1015_v5  ;;  %1270 = vst [vmem:[#allocation19_spill] sm:$0xff] %v1017_v6  ;;  %v1021_v8 = vld [vmem:[%s235_s18 + $0x38] sm:$0xff]  ;;  %v1023_v9 = vld [vmem:[%s235_s18 + $0x48] sm:$0xff]  ;;  %v317_v15 = vsub.f32 %v1019_v7, %v1005_v0  ;;  %s494_s27 = scalar_lea.sflag [#allocation4], %s990_s7  ;;  %s761_s29 = scalar_lea.vmem %s1208_s30, 128 }
  0x47   : > { %v1025_v10 = vld [vmem:[%s235_s18 + $0x50] sm:$0xff]  ;;  %v1027_v11 = vld [vmem:[%s235_s18 + $0x58] sm:$0xff]  ;;  %v1029_v12 = vld [vmem:[%s235_s18 + $0x60] sm:$0xff]  ;;  %v318_v16 = vsub.f32 %v1023_v9, %v1007_v1  ;;  %p762_p2 = scmp.ne.s32.totalorder %s1208_s30, %s761_s29  ;;  %s861_s12 = smov [#allocation7]  }
  0x48   : > { %v1031_v13 = vld [vmem:[%s235_s18 + $0x68] sm:$0xff]  ;;  %v1033_v14 = vld [vmem:[%s235_s18 + $0x70] sm:$0xff]  ;;  %v319_v17 = vsub.f32 %v1025_v10, %v1009_v2  ;;  %v1041_v18 = vld [vmem:[%s235_s18 + $0x78] sm:$0xff]  ;;  %v320_v21 = vsub.f32 %v1027_v11, %v1011_v3  ;;  %v321_v22 = vsub.f32 %v1029_v12, %v1013_v4  ;;  %s765_s3 = sshll.u32 %s861_s12, 4  ;;  %s766_s3 = int_to_ptr.vmem [resolvable:$false] %s765_s3 }
  0x49   : > { %v1044_v19 = vld [vmem:[%s999_s25] sm:$0xff]  ;;  %v1047_v20 = vld [vmem:[%s999_s25 + $0x8] sm:$0xff]  ;;  %v322_v23 = vsub.f32 %v1031_v13, %v1015_v5  ;;  %v323_v24 = vsub.f32 %v1033_v14, %v1017_v6  ;;  %v1058_v25 = vld [vmem:[%s999_s25 + $0x10] sm:$0xff]  ;;  %v324_v27 = vsub.f32 %v1041_v18, %v1021_v8  ;;  %p763_p3 = pnand %p762_p2, %p928_p9  ;;  %s767_s4 = scalar_lea.vmem %s766_s3, 256 }
  0x4a   : > { %v1061_v26 = vld [vmem:[%s999_s25 + $0x18] sm:$0xff]  ;;  %v1066_v28 = vld [vmem:[%s999_s25 + $0x20] sm:$0xff]  ;;  %v1069_v29 = vld [vmem:[%s999_s25 + $0x28] sm:$0xff]  ;;  %v345_v30 = vmax.f32 %v1005_v0, %v1044_v19  ;;  %v346_v31 = vmax.f32 %v1007_v1, %v1047_v20  ;;  %v325_v36 = vmul.f32 %v321_v22, %v317_v15  ;;  %v347_v39 = vmax.f32 %v1009_v2, %v1058_v25  ;;  %p768_p5 = scmp.lt.s32.totalorder %s1208_s30, %s766_s3  ;;  %p769_p6 = scmp.lt.s32.totalorder %s767_s4, %s761_s29 }
  0x4b   : > { %1271 = vst [vmem:[#allocation20_spill] sm:$0xff] %v1066_v28  ;;  %1272 = vst [vmem:[#allocation21_spill] sm:$0xff] %v1069_v29  ;;  %v1078_v33 = vld [vmem:[%s999_s25 + $0x40] sm:$0xff]  ;;  %v1081_v34 = vld [vmem:[%s999_s25 + $0x48] sm:$0xff]  ;;  %v326_v37 = vmul.f32 %v322_v23, %v318_v16  ;;  %v327_v38 = vmul.f32 %v323_v24, %v319_v17  ;;  %v328_v43 = vmul.f32 %v324_v27, %v320_v21  ;;  %p764_p4 = pneg %p763_p3 }
  0x4c   : > { %v1084_v35 = vld [vmem:[%s999_s25 + $0x50] sm:$0xff]  ;;  %v1089_v40 = vld [vmem:[%s999_s25 + $0x58] sm:$0xff]  ;;  %v1092_v41 = vld [vmem:[%s999_s25 + $0x60] sm:$0xff]  ;;  %v329_v44 = vsub.f32 %v1078_v33, %v1044_v19  ;;  %v341_v45 = vmin.f32 %v1019_v7, %v1078_v33  ;;  %v348_v46 = vmax.f32 %v1011_v3, %v1061_v26  ;;  %v330_v49 = vsub.f32 %v1081_v34, %v1047_v20  ;;  %p770_p7 = por %p769_p6, %p768_p5 }
  0x4d   : > { %v1095_v42 = vld [vmem:[%s999_s25 + $0x68] sm:$0xff]  ;;  %v1104_v47 = vld [vmem:[%s999_s25 + $0x30] sm:$0xff]  ;;  %v333_v50 = vsub.f32 %v1092_v41, %v1066_v28  ;;  %v342_v52 = vmin.f32 %v1023_v9, %v1081_v34  ;;  %v331_v53 = vsub.f32 %v1084_v35, %v1058_v25  ;;  %v343_v55 = vmin.f32 %v1025_v10, %v1084_v35  ;;  %v1126_v57 = vld [vmem:[%s999_s25 + $0x38] sm:$0xff] }
  0x4e   : > { %1273 = vst [vmem:[#allocation22_spill] sm:$0xff] %v1104_v47  ;;  %v1107_v48 = vld [vmem:[%s999_s25 + $0x70] sm:$0xff]  ;;  %v334_v51 = vsub.f32 %v1095_v42, %v1069_v29  ;;  %v344_v56 = vmin.f32 %v1027_v11, %v1089_v40  ;;  %v1129_v58 = vld [vmem:[%s999_s25 + $0x78] sm:$0xff]  ;;  %v332_v59 = vsub.f32 %v1089_v40, %v1061_v26  ;;  %v349_v60 = vsub.f32 %v341_v45, %v345_v30  ;;  %p771_p8 = pnand %p770_p7, %p764_p4 }
  0x4f   : > { %v335_v54 = vsub.f32 %v1107_v48, %v1104_v47  ;;  %v361_v61 = vmax.f32 %v1013_v4, %v1066_v28  ;;  %v362_v62 = vmax.f32 %v1015_v5, %v1069_v29  ;;  %v336_v63 = vsub.f32 %v1129_v58, %v1126_v57 }
  0x50   : > { %v350_v15 = vsub.f32 %v342_v52, %v346_v31  ;;  %v351_v16 = vsub.f32 %v343_v55, %v347_v39  ;;  %v352_v17 = vsub.f32 %v344_v56, %v348_v46  ;;  %v337_v21 = vmul.f32 %v333_v50, %v329_v44 }
  0x51   : > { %v338_v22 = vmul.f32 %v334_v51, %v330_v49  ;;  %v357_v23 = vmin.f32 %v1029_v12, %v1092_v41  ;;  %v358_v24 = vmin.f32 %v1031_v13, %v1095_v42  ;;  %v339_v27 = vmul.f32 %v335_v54, %v331_v53 }
  0x52   : > { %v353_v30 = vmax.f32 %v349_v60, 0.0  ;;  %v359_v45 = vmin.f32 %v1033_v14, %v1107_v48  ;;  %v360_v32 = vmin.f32 %v1041_v18, %v1129_v58  ;;  %v363_v31 = vmax.f32 %v1017_v6, %v1104_v47 }
  0x53   : > { %v364_v39 = vmax.f32 %v1021_v8, %v1126_v57  ;;  %v365_v44 = vsub.f32 %v357_v23, %v361_v61  ;;  %v366_v46 = vsub.f32 %v358_v24, %v362_v62  ;;  %v340_v49 = vmul.f32 %v336_v63, %v332_v59 }
  0x54   : > { %v354_v50 = vmax.f32 %v350_v15, 0.0  ;;  %v355_v51 = vmax.f32 %v351_v16, 0.0  ;;  %v356_v52 = vmax.f32 %v352_v17, 0.0  ;;  %v367_v53 = vsub.f32 %v359_v45, %v363_v31  ;;  %v1280_v16 = vld [vmem:[#allocation19_spill] sm:$0xff] }
  0x55   : > { %v368_v54 = vsub.f32 %v360_v32, %v364_v39  ;;  %v369_v55 = vmax.f32 %v365_v44, 0.0  ;;  %v370_v56 = vmax.f32 %v366_v46, 0.0  ;;  %v377_v60 = vadd.f32 %v337_v21, %v325_v36  ;;  %v1279_v15 = vld [vmem:[#allocation22_spill] sm:$0xff] }
  0x56   : > { %v378_v5 = vadd.f32 %v338_v22, %v326_v37  ;;  %v379_v29 = vadd.f32 %v339_v27, %v327_v38  ;;  %v397_v4 = vmax.f32 %v1019_v7, %v1078_v33  ;;  %v371_v6 = vmax.f32 %v367_v53, 0.0 }
  0x57   : > { %v372_v47 = vmax.f32 %v368_v54, 0.0  ;;  %v1153_v28 = vmul.f32 %v369_v55, %v353_v30  ;;  %v398_v59 = vmax.f32 %v1023_v9, %v1081_v34  ;;  %v1157_v61 = vmul.f32 %v370_v56, %v354_v50 }
  0x58   : > { %v399_v32 = vmax.f32 %v1025_v10, %v1084_v35  ;;  %v402_v36 = vmin.f32 %v1007_v1, %v1047_v20  ;;  %v403_v37 = vmin.f32 %v1009_v2, %v1058_v25  ;;  %v1165_v38 = vmul.f32 %v371_v6, %v355_v51 }
  0x59   : > { %v400_v7 = vmax.f32 %v1027_v11, %v1089_v40  ;;  %v404_v33 = vmin.f32 %v1011_v3, %v1061_v26  ;;  %v1274_v9 = vmin.f32 %v1005_v0, %v1044_v19  ;;  %v1174_v62 = vmul.f32 %v372_v47, %v356_v52  ;;  %v1275_v40 = vld [vmem:[#allocation20_spill] sm:$0xff] }
  0x5a   : > { %v380_v10 = vadd.f32 %v340_v49, %v328_v43  ;;  %v381_v1 = vsub.f32 %v377_v60, %v1153_v28  ;;  %v458_v20 = vlaneseq  ;;  %v382_v2 = vsub.f32 %v378_v5, %v1157_v61  ;;  %v1276_v43 = vld [vmem:[#allocation17_spill] sm:$0xff] }
  0x5b   : > { %v405_v34 = vsub.f32 %v397_v4, %v1274_v9  ;;  %v406_v6 = vsub.f32 %v398_v59, %v402_v36  ;;  %v407_v25 = vsub.f32 %v399_v32, %v403_v37  ;;  %v413_v11 = vmax.f32 %v1029_v12, %v1092_v41  ;;  %v1277_v12 = vld [vmem:[#allocation21_spill] sm:$0xff]  ;;  %v1278_v41 = vld [vmem:[#allocation18_spill] sm:$0xff] }
  0x5c   : > { %v383_v35 = vsub.f32 %v379_v29, %v1165_v38  ;;  %v408_v3 = vsub.f32 %v400_v7, %v404_v33  ;;  %v414_v0 = vmax.f32 %v1031_v13, %v1095_v42  ;;  %v384_v4 = vsub.f32 %v380_v10, %v1174_v62 }
  0x5d   : > { %v409_v26 = vmax.f32 %v405_v34, 0.0  ;;  %v415_v19 = vmax.f32 %v1033_v14, %v1107_v48  ;;  %v416_v5 = vmax.f32 %v1041_v18, %v1129_v58  ;;  %v417_v47 = vmin.f32 %v1276_v43, %v1275_v40 }
  0x5e   : > { %v385_v63 = vmax.f32 %v381_v1, 1e-06  ;;  %v418_v29 = vmin.f32 %v1278_v41, %v1277_v12  ;;  %v419_v17 = vmin.f32 %v1280_v16, %v1279_v15  ;;  %v420_v13 = vmin.f32 %v1021_v8, %v1126_v57 }
  0x5f   : > { %v386_v42 = vmax.f32 %v382_v2, 1e-06  ;;  %v410_v21 = vmax.f32 %v406_v6, 0.0  ;;  %v411_v22 = vmax.f32 %v407_v25, 0.0  ;;  %v421_v14 = vsub.f32 %v413_v11, %v417_v47 }
  0x60   : > { %v412_v48 = vmax.f32 %v408_v3, 0.0  ;;  %v422_v23 = vsub.f32 %v414_v0, %v418_v29  ;;  %v423_v18 = vsub.f32 %v415_v19, %v419_v17  ;;  %v424_v58 = vsub.f32 %v416_v5, %v420_v13 }
  0x61   : > { %v387_v24 = vmax.f32 %v383_v35, 1e-06  ;;  %v425_v27 = vmax.f32 %v421_v14, 0.0  ;;  %v388_v30 = vmax.f32 %v384_v4, 1e-06  ;;  %745 = vrcp.f32 %v385_v63 }
  0x62   : > { %v426_v45 = vmax.f32 %v422_v23, 0.0  ;;  %v427_v31 = vmax.f32 %v423_v18, 0.0  ;;  %v428_v39 = vmax.f32 %v424_v58, 0.0  ;;  %v459_v46 = vshrl.u32 %v458_v20, 7 }
  0x63   : > { %v429_v44 = vmul.f32 %v425_v27, %v409_v26  ;;  %747 = vrcp.f32 %v386_v42  ;;  %v470_v59 = vstv %s652_s21  ;;  %v464_v7 = vand.u32 127, %v458_v20 }
  0x64   : > { %v430_v8 = vmul.f32 %v426_v45, %v410_v21  ;;  %v431_v57 = vmul.f32 %v427_v31, %v411_v22  ;;  %v432_v49 = vmul.f32 %v428_v39, %v412_v48  ;;  %749 = vrcp.f32 %v387_v24 }
  0x65   : > { %v433_v50 = vmax.f32 %v429_v44, 1e-06  ;;  %751 = vrcp.f32 %v388_v30  ;;  %v460_v54 = vadd.s32 8, %v459_v46  ;;  %v461_v55 = vadd.s32 16, %v459_v46 }
  0x66   : > { %v434_v51 = vmax.f32 %v430_v8, 1e-06  ;;  %v435_v52 = vmax.f32 %v431_v57, 1e-06  ;;  %v436_v53 = vmax.f32 %v432_v49, 1e-06 }
  0x67   : > { %753 = vrcp.f32 %v433_v50  ;;  %v462_v56 = vadd.s32 24, %v459_v46  ;;  %v466_v60 = vmul.u32 128, %v459_v46  ;;  %v467_v32 = vmul.u32 128, %v460_v54 }
  0x68   : > { %755 = vrcp.f32 %v434_v51  ;;  %v468_v36 = vmul.u32 128, %v461_v55  ;;  %v437_v10 = vsub.f32 %v433_v50, %v385_v63  ;;  %v438_v11 = vsub.f32 %v434_v51, %v386_v42 }
  0x69   : > { %757 = vrcp.f32 %v435_v52  ;;  %v469_v33 = vmul.u32 128, %v462_v56  ;;  %v471_v9 = vadd.s32 %v470_v59, %v466_v60  ;;  %v472_v2 = vadd.s32 %v470_v59, %v467_v32 }
  0x6a   : > { %759 = vrcp.f32 %v436_v53  ;;  %v473_v35 = vadd.s32 %v470_v59, %v468_v36  ;;  %v439_v26 = vsub.f32 %v435_v52, %v387_v24  ;;  %v440_v5 = vsub.f32 %v436_v53, %v388_v30 }
  0x6b   : > { %v746_v37 = vpop.eup %745  ;;  %v474_v0 = vadd.s32 %v470_v59, %v469_v33  ;;  %v475_v4 = vadd.s32 %v471_v9, %v464_v7  ;;  %v476_v47 = vadd.s32 %v472_v2, %v464_v7 }
  0x6c   : > { %v393_v25 = vmul.f32 %v746_v37, %v1153_v28  ;;  %v477_v29 = vadd.s32 %v473_v35, %v464_v7 }
  0x6d   : > { %v748_v34 = vpop.eup %747  ;;  %v478_v17 = vadd.s32 %v474_v0, %v464_v7  ;;  %vm479_vm0 = vcmp.lt.s32.totalorder %v475_v4, 6000  ;;  %vm480_vm1 = vcmp.lt.s32.totalorder %v476_v47, 6000 }
  0x6e   : > { %v750_v1 = vpop.eup %749  ;;  %v394_v19 = vmul.f32 %v748_v34, %v1157_v61  ;;  %vm481_vm2 = vcmp.lt.s32.totalorder %v477_v29, 6000 }
  0x6f   : > { %v752_v6 = vpop.eup %751  ;;  %v395_v43 = vmul.f32 %v750_v1, %v1165_v38  ;;  %vm482_vm3 = vcmp.lt.s32.totalorder %v478_v17, 6000 }
  0x70   : > { %v396_v12 = vmul.f32 %v752_v6, %v1174_v62 }
  0x71   : > { %v754_v3 = vpop.eup %753 }
  0x72   : > { %v445_v40 = vmul.f32 %v754_v3, %v437_v10  ;;  %v756_v20 = vpop.eup %755 }
  0x73   : > { %v758_v63 = vpop.eup %757  ;;  %v446_v41 = vmul.f32 %v756_v20, %v438_v11 }
  0x74   : > { %v449_v28 = vsub.f32 %v393_v25, %v445_v40  ;;  %v760_v15 = vpop.eup %759  ;;  %v447_v16 = vmul.f32 %v758_v63, %v439_v26 }
  0x75   : > { %v448_v13 = vmul.f32 %v760_v15, %v440_v5  ;;  %v450_v42 = vsub.f32 %v394_v19, %v446_v41 }
  0x76   : > { %v453_v61 = vsub.f32 1.0, %v449_v28  ;;  %v451_v21 = vsub.f32 %v395_v43, %v447_v16 }
  0x77   : > { %v452_v38 = vsub.f32 %v396_v12, %v448_v13  ;;  %v454_v22 = vsub.f32 1.0, %v450_v42 }
  0x78   : > { %v483_v14 = vsel %vm479_vm0, %v453_v61, 0.0  ;;  %v455_v62 = vsub.f32 1.0, %v451_v21 }
  0x79   : > { %v456_v48 = vsub.f32 1.0, %v452_v38  ;;  %v484_v23 = vsel %vm480_vm1, %v454_v22, 0.0 }
  0x7a   : > { %v485_v18 = vsel %vm481_vm2, %v455_v62, 0.0  ;;  %v488_v58 = vadd.f32 %v484_v23, %v483_v14 }
  0x7b   : > { %v486_v24 = vsel %vm482_vm3, %v456_v48, 0.0 }
  0x7c   : > { %v489_v27 = vadd.f32 %v488_v58, %v485_v18 }
  0x7e   : > { %v490_v30 = vadd.f32 %v489_v27, %v486_v24 }
  0x80   : > { %492 = vst [vmem:[%s269_s20] sm:$0xff] %v490_v30 }
  0x81   : > { %774 = shalt.err (!%p771_p8)
}
  0x82   : > { %s775_s7 = scalar_lea.hbm %s1206_s26, 128  ;;  %s779_s18 = scalar_lea.hbm %s1257_s2, 256 }
  0x83   : > { %p776_p10 = scmp.ne.s32.totalorder %s1206_s26, %s775_s7  ;;  %p780_p1 = scmp.lt.u32.totalorder %s1206_s26, %s1257_s2 }
  0x84   : > { %p781_p2 = scmp.lt.u32.totalorder %s779_s18, %s775_s7  ;;  %p783_p4 = scmp.lt.u32.totalorder %s775_s7, %s1206_s26 }
  0x85   : > { %p777_p13 = pnand %p776_p10, %p928_p9 }
  0x86   : > { %p782_p3 = por %p781_p2, %p780_p1 }
  0x87   : > { %p778_p0 = pneg %p777_p13 }
  0x88   : > { %p784_p5 = por %p783_p4, %p782_p3 }
  0x8a   : > { %p785_p6 = pnand %p784_p5, %p778_p0 }
  0x8c   : > { %788 = shalt.err (!%p785_p6)
}
  0x8d   : > { %677 = dma.vmem_to_hbm [thread:$0]  (%p928_p9), %s1208_s30, 128, %s1206_s26, %s494_s27  }
  0x8e PF: > { %s519_s21 = sand.u32 1, %s827_s9   ;;  %p680_p7 = pnand %p613_p12, %p935_p11 }
  0x8f   : > { %s520_s8 = scalar_lea.sflag [#allocation4], %s519_s21 }
  0x90   : > { %822 = dma.done.wait (!%p680_p7), %s520_s8, 128  }
  0x91   : > { %824 = vsyncadd (!%p680_p7), %s520_s8, 4294967168  ;;  %s21_s14 = sadd.s32 1, %s847_s14   ;;  %s1281_s9 = smov %s831_s10 }
  0x92   : > { %p18_p8 = scmp.ge.s32.totalorder %s21_s14, 4   ;;  %s1282_s10 = smov %s835_s11 }
  0x93   : > { %s1283_s11 = smov %s933_s23  ;;  %s1284_s12 = smov %s843_s13 }
  0x94   : > { %s1285_s13 = smov %s1287_s17  ;;  %20 = sbr.rel (!%p18_p8) target bundleno = 8 (0x8), region = 106 }
  0x9b   :  { %525 = vsyncpa [#allocation3], 1 }
  0x9c   :  { %527 = vsyncpa [#allocation3 + $0x1], 1 }
  0x9d   :  { %528 = vsyncpa [#allocation6], 1 }
  0x9e   :  { %530 = vsyncpa [#allocation6 + $0x1], 1 }
  0x9f   :  { %531 = vsyncpa [#allocation4], 1 }
  0xa0   :  { %533 = vsyncpa [#allocation4 + $0x1], 1 }

</bundles_post_ra>
